<compile_context>
chip_gen: v7x
topology: tpu7x:2x2x1
jax: 0.10.0
libtpu: 0.0.40
codegen_flags: <defaults>
</compile_context>

<pallas_src>
import math
import numpy as np
import jax
import jax.numpy as jnp
from jax.experimental import pallas as pl
from jax.experimental.pallas import tpu as pltpu


_IDX_LANES = 8                        # narrow lane-dense width for VQ indices
_AUX_LANES = 8                        # [y_embed, x_embed, mask, 0, 0, 0, 0, 0]
_VMEM_LIMIT_BYTES = 32 * 1024 * 1024  # sized for v7x scoped VMEM; tiny tiles anyway


def _pick_row_tile(n_rows, target):
    """Row tile: multiple of 8 sublanes, prefers exact divisors of n_rows
    (no pad copies) and a grid length >= 2 (v7x megacore sharding)."""
    n_rows = int(n_rows)
    target = int(target)
    if n_rows <= 8:
        return n_rows
    t = min(target, n_rows)
    t = max(8, t - (t % 8))
    tn = None
    for cand in range(t, 7, -8):
        if n_rows % cand == 0:
            tn = cand
            break
    if tn is None:
        tn = t
    if n_rows // tn < 2:
        half = tn // 2
        if half >= 8 and half % 8 == 0 and n_rows % half == 0:
            tn = half
    return tn


def _pad_rows(a, n_pad):
    n = a.shape[0]
    if n_pad == n:
        return a
    pad = ((0, n_pad - n),) + ((0, 0),) * (a.ndim - 1)
    return jnp.pad(a, pad)


# ----------------------------------------------------------------------------
# Kernel 1: fused 1x1 conv + vector quantization
# ----------------------------------------------------------------------------
def _conv_vq_kernel(x_ref, w_ref, b_ref, e_ref, e2_ref, xqq_ref, idx_ref):
    x = x_ref[...]                                            # (tn, Cin)
    xq = jnp.dot(x, w_ref[...], preferred_element_type=jnp.float32) + b_ref[...]

    # --- vector quantization: nearest codeword ---
    e = e_ref[...]                                            # (K, C)
    K = e.shape[0]
    # scores = xq @ e.T without an explicit transpose (contract last dims)
    scores = jax.lax.dot_general(
        xq, e, dimension_numbers=(((1,), (1,)), ((), ())),
        preferred_element_type=jnp.float32)                   # (tn, K)
    # ||x - e_k||^2 up to a per-row constant:  e_k^2 - 2 x.e_k  (x^2 dropped)
    dist = e2_ref[...] - 2.0 * scores                         # (tn, K)
    iota = jax.lax.broadcasted_iota(jnp.int32, dist.shape, 1)
    min_d = jnp.min(dist, axis=-1, keepdims=True)
    # argmin with first-occurrence tie-break
    idx = jnp.min(jnp.where(dist <= min_d, iota, K), axis=-1, keepdims=True)
    onehot = (iota == idx).astype(jnp.float32)                # (tn, K)
    quant = jnp.dot(onehot, e, preferred_element_type=jnp.float32)  # (tn, C)

    # single dense (tn, 2C) writeback: [xq | quant]
    xqq_ref[...] = jnp.concatenate([xq, quant], axis=-1)
    # narrow lane-dense index writeback (col 0 sliced in the wrapper)
    idx_ref[...] = jnp.broadcast_to(idx, idx_ref.shape)


def conv_vq(x, conv_w, conv_b, codebook, tn):
    """x:(N,Cin) -> (xqq:(N,2C) = [xq|quant], idx:(N,_IDX_LANES) int32)."""
    N, Cin = x.shape
    K, C = codebook.shape
    assert N % tn == 0
    e2 = jnp.sum(codebook * codebook, axis=-1).reshape(1, K)  # precomputed norms
    return pl.pallas_call(
        _conv_vq_kernel,
        out_shape=(
            jax.ShapeDtypeStruct((N, 2 * C), jnp.float32),
            jax.ShapeDtypeStruct((N, _IDX_LANES), jnp.int32),
        ),
        grid_spec=pltpu.PrefetchScalarGridSpec(
            num_scalar_prefetch=0,
            grid=(N // tn,),
            in_specs=[
                pl.BlockSpec((tn, Cin), lambda i: (i, 0)),     # row stream
                pl.BlockSpec((Cin, C), lambda i: (0, 0)),      # resident
                pl.BlockSpec((1, C), lambda i: (0, 0)),        # resident
                pl.BlockSpec((K, C), lambda i: (0, 0)),        # resident
                pl.BlockSpec((1, K), lambda i: (0, 0)),        # resident
            ],
            out_specs=[
                pl.BlockSpec((tn, 2 * C), lambda i: (i, 0)),
                pl.BlockSpec((tn, _IDX_LANES), lambda i: (i, 0)),
            ],
        ),
        compiler_params=pltpu.CompilerParams(
            dimension_semantics=("parallel",),
            vmem_limit_bytes=_VMEM_LIMIT_BYTES,
        ),
    )(x, conv_w, conv_b.reshape(1, C), codebook, e2)


# ----------------------------------------------------------------------------
# Kernel 2: pos-linear + mask-mix + in-kernel sine position encoding + LayerNorm
# ----------------------------------------------------------------------------
def _pos_mix_ln_kernel(xqq_ref, aux_ref, w_ref, b_ref,
                       ys_ref, xs_ref, ph_ref, me_ref, g_ref, beta_ref, o_ref):
    C = o_ref.shape[-1]
    xqq = xqq_ref[...]                                        # (tn, 2C)
    xq = xqq[:, :C]                                           # conv output (residual)
    quant = xqq[:, C:]                                        # VQ embedding
    aux = aux_ref[...]                                        # (tn, 8)
    y_emb = aux[:, 0:1]
    x_emb = aux[:, 1:2]
    m = aux[:, 2:3]                                           # token mask

    q = jnp.dot(quant, w_ref[...],
                preferred_element_type=jnp.float32) + b_ref[...]   # pos_line
    emb = q + xq                                              # + xq_img residual

    # sine position encoding on the EUP: cos(x) == sin(x + pi/2) folded into phase
    pos = jnp.sin(y_emb * ys_ref[...] + x_emb * xs_ref[...] + ph_ref[...])

    y = emb * (1.0 - m) + me_ref[...] * m + pos
    mean = jnp.mean(y, axis=-1, keepdims=True)
    d = y - mean
    var = jnp.mean(d * d, axis=-1, keepdims=True)
    o_ref[...] = d * jax.lax.rsqrt(var + 1e-5) * g_ref[...] + beta_ref[...]


def pos_mix_ln(xqq, aux, pos_w, pos_b, y_scale, x_scale, phase,
               mask_emb, gamma, beta, tn):
    N = xqq.shape[0]
    C = pos_w.shape[0]
    assert N % tn == 0
    return pl.pallas_call(
        _pos_mix_ln_kernel,
        out_shape=jax.ShapeDtypeStruct((N, C), jnp.float32),
        grid_spec=pltpu.PrefetchScalarGridSpec(
            num_scalar_prefetch=0,
            grid=(N // tn,),
            in_specs=[
                pl.BlockSpec((tn, 2 * C), lambda i: (i, 0)),      # [xq|quant] stream
                pl.BlockSpec((tn, _AUX_LANES), lambda i: (i, 0)), # y/x/mask stream
                pl.BlockSpec((C, C), lambda i: (0, 0)),           # resident
                pl.BlockSpec((1, C), lambda i: (0, 0)),           # resident
                pl.BlockSpec((1, C), lambda i: (0, 0)),           # resident
                pl.BlockSpec((1, C), lambda i: (0, 0)),           # resident
                pl.BlockSpec((1, C), lambda i: (0, 0)),           # resident
                pl.BlockSpec((1, C), lambda i: (0, 0)),           # resident
                pl.BlockSpec((1, C), lambda i: (0, 0)),           # resident
                pl.BlockSpec((1, C), lambda i: (0, 0)),           # resident
            ],
            out_specs=pl.BlockSpec((tn, C), lambda i: (i, 0)),
        ),
        compiler_params=pltpu.CompilerParams(
            dimension_semantics=("parallel",),
            vmem_limit_bytes=_VMEM_LIMIT_BYTES,
        ),
    )(xqq, aux, pos_w, pos_b.reshape(1, C),
      y_scale, x_scale, phase,
      mask_emb.reshape(1, C), gamma.reshape(1, C), beta.reshape(1, C))


# ----------------------------------------------------------------------------
# Glue: pooling, masks, position-encoding tables (plain JAX / numpy)
# ----------------------------------------------------------------------------
def max_pool_2x2(x):
    # x: (B, C, H, W) NCHW
    B, C, H, W = x.shape
    return x.reshape(B, C, H // 2, 2, W // 2, 2).max(axis=(3, 5))


def get_vis_mask(b, img_meta):
    # NOTE: pad_shape[0] is used for both h and w (bug preserved from reference).
    h = max(meta["pad_shape"][0] for meta in img_meta)
    w = max(meta["pad_shape"][0] for meta in img_meta)
    mask = np.zeros((b, 1, h, w), dtype=np.float32)
    groups = b // len(img_meta)
    for i, meta in enumerate(img_meta):
        imh, imw, _ = meta["img_shape"]
        mask[i * groups:(i + 1) * groups, 0, :imh, :imw] = 1.0
    return jnp.asarray(mask)


def interpolate_nearest(mask, out_h, out_w):
    # mask: (B, 1, H, W) -> (B, 1, out_h, out_w), F.interpolate(mode='nearest')
    _, _, H, W = mask.shape
    src_h = jnp.floor(jnp.arange(out_h) * (H / out_h)).astype(jnp.int32)
    src_w = jnp.floor(jnp.arange(out_w) * (W / out_w)).astype(jnp.int32)
    return mask[:, :, src_h, :][:, :, :, src_w]


def _pos_tables(C):
    """Per-channel (1, C) tables so pos[c] = sin(y*ys[c] + x*xs[c] + phase[c])."""
    pfd = C // 2
    d = np.arange(pfd, dtype=np.float64)
    dim_t = 10000.0 ** (2.0 * np.floor(d / 2.0) / pfd)
    freq = (1.0 / dim_t).astype(np.float32)
    phase_half = ((d % 2) * (math.pi / 2.0)).astype(np.float32)  # cos = sin(+pi/2)
    y_scale = np.concatenate([freq, np.zeros(pfd, np.float32)])
    x_scale = np.concatenate([np.zeros(pfd, np.float32), freq])
    phase = np.concatenate([phase_half, phase_half])
    return (jnp.asarray(y_scale).reshape(1, C),
            jnp.asarray(x_scale).reshape(1, C),
            jnp.asarray(phase).reshape(1, C))


# ----------------------------------------------------------------------------
# Full forward
# ----------------------------------------------------------------------------
def simple_vd_forward(img, img_meta, params, mask_prob, rng_key, row_tile=2048):
    """img: (B, Cin, H, W) NCHW float32 (last level of the FPN list)."""
    B, Cin, H, W = img.shape
    C = params["conv_w"].shape[1]

    # 1) max-pool 2x2 stride 2
    x = max_pool_2x2(img)                                     # (B, Cin, h, w)
    h, w = x.shape[2], x.shape[3]
    N = B * h * w
    tn = _pick_row_tile(N, row_tile)
    N_pad = pl.cdiv(N, tn) * tn                               # == N in the common case

    # 2+3) fused 1x1 conv + vector quantization (row-tiled Pallas kernel 1)
    # TODO(synk): SOHO_Pre_VD's EMA codebook update (training-time) is not modeled;
    # forward nearest-codeword lookup only.
    x_nhwc = jnp.transpose(x, (0, 2, 3, 1)).reshape(N, Cin)
    xqq, idx_wide = conv_vq(
        _pad_rows(x_nhwc, N_pad),
        params["conv_w"], params["conv_b"], params["codebook"], tn)
    idx = idx_wide[:N, 0]                                     # (N,) int32

    # 4) visual mask + (normalized) cumulative embeds for the position encoding
    vis_mask = get_vis_mask(B, img_meta)                      # (B,1,Hm,Wm)
    vis_mask = interpolate_nearest(vis_mask, h, w)
    vis_mask = (vis_mask != 0).astype(jnp.float32)            # bool -> float
    vm2d = vis_mask[:, 0, :, :]                               # (B, h, w)
    eps = 1e-6
    y_embed = jnp.cumsum(vm2d, axis=1)
    x_embed = jnp.cumsum(vm2d, axis=2)
    y_embed = y_embed / (y_embed[:, -1:, :] + eps) * (2.0 * math.pi)
    x_embed = x_embed / (x_embed[:, :, -1:] + eps) * (2.0 * math.pi)
    y_scale, x_scale, phase = _pos_tables(C)

    # 5) random-token masking (same semantics as the torch code; np.random.randint
    #    and torch.bernoulli are replaced by draws from the JAX RNG key)
    k_tmp, k_bern = jax.random.split(rng_key)
    idx_img = idx.reshape(B, h, w).astype(jnp.float32)[:, None, :, :]   # (B,1,h,w)
    idx_img = idx_img * vis_mask - 100.0 * (1.0 - vis_mask)
    tmp = jax.random.randint(k_tmp, (), 0, h * w)
    tmp_label = jax.lax.dynamic_slice(
        idx_img, (0, 0, tmp // w, tmp % w), (B, 1, 1, 1))               # (B,1,1,1)
    masked_indices = (idx_img == tmp_label).astype(jnp.float32) * vis_mask
    masked2 = jax.random.bernoulli(k_bern, p=mask_prob, shape=(B, 1, 1, 1))
    masked_indices = masked_indices * masked2.astype(jnp.float32)       # (B,1,h,w)

    # 6) build the tiny per-row aux stream [y_embed, x_embed, mask, 0...] (N, 8)
    y_flat = y_embed.reshape(N, 1)
    x_flat = x_embed.reshape(N, 1)
    m_flat = jnp.transpose(masked_indices, (0, 2, 3, 1)).reshape(N, 1)
    aux = jnp.concatenate(
        [y_flat, x_flat, m_flat, jnp.zeros((N, _AUX_LANES - 3), jnp.float32)],
        axis=-1)

    # 7) fused pos-linear + masked-mix + in-kernel pos encoding + LayerNorm (kernel 2)
    xq_ln = pos_mix_ln(
        xqq, _pad_rows(aux, N_pad),
        params["pos_w"], params["pos_b"], y_scale, x_scale, phase,
        params["mask_emb"], params["ln_g"], params["ln_b"], tn,
    )[:N]                                                     # (N, C)

    # 8) outputs
    xq_out = xq_ln.reshape(B, h * w, C)                       # (B, hw, C)
    vis_out = vis_mask.reshape(B, -1).astype(jnp.int32)       # (B, hw)
    labels = idx_img * masked_indices - 100.0 * (1.0 - masked_indices)
    labels = labels.astype(jnp.int32).reshape(B, -1)          # (B, hw)
    return xq_out, vis_out, labels


# ----------------------------------------------------------------------------
# Main
# ----------------------------------------------------------------------------
if __name__ == "__main__":
    B, Cin, H, W = 2, 4, 16, 16
    C = 32            # out_channels
    K = 16            # num_tokens
    mask_prob = 0.015

    key = jax.random.PRNGKey(0)
    k_img, k_cw, k_cb, k_code, k_pw, k_pb, k_me, k_fwd = jax.random.split(key, 8)

    img = jax.random.normal(k_img, (B, Cin, H, W), jnp.float32)
    img_meta = [
        {"pad_shape": (16, 16, 3), "img_shape": (12, 16, 3)},
        {"pad_shape": (16, 16, 3), "img_shape": (16, 10, 3)},
    ]

    params = {
        "conv_w": jax.random.normal(k_cw, (Cin, C), jnp.float32) * 0.1,
        "conv_b": jax.random.normal(k_cb, (C,), jnp.float32) * 0.01,
        "codebook": jax.random.normal(k_code, (K, C), jnp.float32),
        "pos_w": jax.random.normal(k_pw, (C, C), jnp.float32) * 0.1,
        "pos_b": jax.random.normal(k_pb, (C,), jnp.float32) * 0.01,
        "mask_emb": jax.random.normal(k_me, (C,), jnp.float32),
        "ln_g": jnp.ones((C,), jnp.float32),
        "ln_b": jnp.zeros((C,), jnp.float32),
    }

    # N = B*(H/2)*(W/2) = 128; _pick_row_tile gives tn=64 -> grid=(2,), so even
    # the tiny demo exercises the pipelined / megacore-shardable path.
    xq, visual_mask, labels = simple_vd_forward(img, img_meta, params, mask_prob, k_fwd)

    jax.block_until_ready((xq, visual_mask, labels))
    assert xq.shape == (B, (H // 2) * (W // 2), C)
    assert visual_mask.shape == (B, (H // 2) * (W // 2))
    assert labels.shape == (B, (H // 2) * (W // 2))
    print("KERNEL_OK")
</pallas_src>

<mosaic_0001>
module attributes {stable_mosaic.version = 11 : i64} {
  func.func @_conv_vq_kernel(%arg0: i32, %arg1: memref<64x4xf32, #tpu.memory_space<vmem>>, %arg2: memref<4x32xf32, #tpu.memory_space<vmem>>, %arg3: memref<1x32xf32, #tpu.memory_space<vmem>>, %arg4: memref<16x32xf32, #tpu.memory_space<vmem>>, %arg5: memref<1x16xf32, #tpu.memory_space<vmem>>, %arg6: memref<64x64xf32, #tpu.memory_space<vmem>>, %arg7: memref<64x8xi32, #tpu.memory_space<vmem>>) attributes {dimension_semantics = [#tpu.dimension_semantics<parallel>], iteration_bounds = array<i64: 2>, scalar_prefetch = 0 : i64, scratch_operands = 0 : i64, tpu.core_type = #tpu.core_type<tc>, window_params = [{transform_indices = @transform_0, window_bounds = array<i64: 64, 4>}, {pipeline_mode = #tpu.pipeline_mode<synchronous>, transform_indices = @transform_1, window_bounds = array<i64: 4, 32>}, {pipeline_mode = #tpu.pipeline_mode<synchronous>, transform_indices = @transform_2, window_bounds = array<i64: 1, 32>}, {pipeline_mode = #tpu.pipeline_mode<synchronous>, transform_indices = @transform_3, window_bounds = array<i64: 16, 32>}, {pipeline_mode = #tpu.pipeline_mode<synchronous>, transform_indices = @transform_4, window_bounds = array<i64: 1, 16>}, {transform_indices = @transform_5, window_bounds = array<i64: 64, 64>}, {transform_indices = @transform_6, window_bounds = array<i64: 64, 8>}]} {
    %c0 = arith.constant 0 : index
    %c0_0 = arith.constant 0 : index
    %0 = vector.load %arg1[%c0, %c0_0] : memref<64x4xf32, #tpu.memory_space<vmem>>, vector<64x4xf32>
    %c0_1 = arith.constant 0 : index
    %c0_2 = arith.constant 0 : index
    %1 = vector.load %arg2[%c0_1, %c0_2] : memref<4x32xf32, #tpu.memory_space<vmem>>, vector<4x32xf32>
    %cst = arith.constant dense<0.000000e+00> : vector<64x32xf32>
    %2 = tpu.matmul %0, %1, %cst {dimension_numbers = #tpu.dot_dimension_numbers<[1], [0], [0], [1], [0, 0, 1, 1], [], []>} : vector<64x4xf32>, vector<4x32xf32>, vector<64x32xf32> -> vector<64x32xf32>
    %c0_3 = arith.constant 0 : index
    %c0_4 = arith.constant 0 : index
    %3 = vector.load %arg3[%c0_3, %c0_4] : memref<1x32xf32, #tpu.memory_space<vmem>>, vector<1x32xf32>
    %4 = vector.broadcast %3 : vector<1x32xf32> to vector<64x32xf32>
    %5 = arith.addf %2, %4 : vector<64x32xf32>
    %c0_5 = arith.constant 0 : index
    %c0_6 = arith.constant 0 : index
    %6 = vector.load %arg4[%c0_5, %c0_6] : memref<16x32xf32, #tpu.memory_space<vmem>>, vector<16x32xf32>
    %cst_7 = arith.constant dense<0.000000e+00> : vector<64x16xf32>
    %7 = tpu.matmul %5, %6, %cst_7 {dimension_numbers = #tpu.dot_dimension_numbers<[1], [1], [0], [0], [0, 0, 1, 0], [], []>} : vector<64x32xf32>, vector<16x32xf32>, vector<64x16xf32> -> vector<64x16xf32>
    %c0_8 = arith.constant 0 : index
    %c0_9 = arith.constant 0 : index
    %8 = vector.load %arg5[%c0_8, %c0_9] : memref<1x16xf32, #tpu.memory_space<vmem>>, vector<1x16xf32>
    %cst_10 = arith.constant 2.000000e+00 : f32
    %9 = vector.broadcast %cst_10 : f32 to vector<64x16xf32>
    %10 = arith.mulf %9, %7 : vector<64x16xf32>
    %11 = vector.broadcast %8 : vector<1x16xf32> to vector<64x16xf32>
    %12 = arith.subf %11, %10 : vector<64x16xf32>
    %13 = tpu.iota {dimensions = array<i32: 1>} : vector<64x16xi32>
    %cst_11 = arith.constant dense<0x7F800000> : vector<64xf32>
    %14 = vector.multi_reduction <minimumf>, %12, %cst_11 [1] : vector<64x16xf32> to vector<64xf32>
    %15 = vector.shape_cast %14 : vector<64xf32> to vector<64x1xf32>
    %16 = vector.broadcast %15 : vector<64x1xf32> to vector<64x16xf32>
    %17 = arith.cmpf ole, %12, %16 : vector<64x16xf32>
    %c16_i32 = arith.constant 16 : i32
    %18 = vector.broadcast %c16_i32 : i32 to vector<64x16xi32>
    %19 = arith.select %17, %13, %18 : vector<64x16xi1>, vector<64x16xi32>
    %cst_12 = arith.constant dense<2147483647> : vector<64xi32>
    %20 = vector.multi_reduction <minsi>, %19, %cst_12 [1] : vector<64x16xi32> to vector<64xi32>
    %21 = vector.shape_cast %20 : vector<64xi32> to vector<64x1xi32>
    %22 = vector.broadcast %21 : vector<64x1xi32> to vector<64x16xi32>
    %23 = arith.cmpi eq, %13, %22 : vector<64x16xi32>
    %24 = arith.extui %23 : vector<64x16xi1> to vector<64x16xi32>
    %25 = arith.sitofp %24 : vector<64x16xi32> to vector<64x16xf32>
    %cst_13 = arith.constant dense<0.000000e+00> : vector<64x32xf32>
    %26 = tpu.matmul %25, %6, %cst_13 {dimension_numbers = #tpu.dot_dimension_numbers<[1], [0], [0], [1], [0, 0, 1, 1], [], []>} : vector<64x16xf32>, vector<16x32xf32>, vector<64x32xf32> -> vector<64x32xf32>
    %27 = tpu.concatenate %5, %26 in 1 : vector<64x32xf32>, vector<64x32xf32> -> vector<64x64xf32>
    %c0_14 = arith.constant 0 : index
    %c0_15 = arith.constant 0 : index
    %28 = vector.load %arg6[%c0_14, %c0_15] : memref<64x64xf32, #tpu.memory_space<vmem>>, vector<64x64xf32>
    tpu.vector_store %arg6[%c0_14, %c0_15], %27 {strides = array<i32>} : memref<64x64xf32, #tpu.memory_space<vmem>>, vector<64x64xf32>,
    %29 = vector.shape_cast %21 : vector<64x1xi32> to vector<64x1xi32>
    %30 = vector.broadcast %29 : vector<64x1xi32> to vector<64x8xi32>
    %c0_16 = arith.constant 0 : index
    %c0_17 = arith.constant 0 : index
    %31 = vector.load %arg7[%c0_16, %c0_17] : memref<64x8xi32, #tpu.memory_space<vmem>>, vector<64x8xi32>
    tpu.vector_store %arg7[%c0_16, %c0_17], %30 {strides = array<i32>} : memref<64x8xi32, #tpu.memory_space<vmem>>, vector<64x8xi32>,
    return
  }
  func.func @transform_0(%arg0: i32) -> (i32, i32) {
    %c0_i32 = arith.constant 0 : i32
    %c0_i32_0 = arith.constant 0 : i32
    return %arg0, %c0_i32 : i32, i32
  }
  func.func @transform_1(%arg0: i32) -> (i32, i32) {
    %c0_i32 = arith.constant 0 : i32
    %c0_i32_0 = arith.constant 0 : i32
    %c0_i32_1 = arith.constant 0 : i32
    return %c0_i32, %c0_i32_0 : i32, i32
  }
  func.func @transform_2(%arg0: i32) -> (i32, i32) {
    %c0_i32 = arith.constant 0 : i32
    %c0_i32_0 = arith.constant 0 : i32
    %c0_i32_1 = arith.constant 0 : i32
    return %c0_i32, %c0_i32_0 : i32, i32
  }
  func.func @transform_3(%arg0: i32) -> (i32, i32) {
    %c0_i32 = arith.constant 0 : i32
    %c0_i32_0 = arith.constant 0 : i32
    %c0_i32_1 = arith.constant 0 : i32
    return %c0_i32, %c0_i32_0 : i32, i32
  }
  func.func @transform_4(%arg0: i32) -> (i32, i32) {
    %c0_i32 = arith.constant 0 : i32
    %c0_i32_0 = arith.constant 0 : i32
    %c0_i32_1 = arith.constant 0 : i32
    return %c0_i32, %c0_i32_0 : i32, i32
  }
  func.func @transform_5(%arg0: i32) -> (i32, i32) {
    %c0_i32 = arith.constant 0 : i32
    %c0_i32_0 = arith.constant 0 : i32
    return %arg0, %c0_i32 : i32, i32
  }
  func.func @transform_6(%arg0: i32) -> (i32, i32) {
    %c0_i32 = arith.constant 0 : i32
    %c0_i32_0 = arith.constant 0 : i32
    return %arg0, %c0_i32 : i32, i32
  }
}

</mosaic_0001>

<bundles_post_ra>
// kernel: tpu_custom_call.1
= control target key start
LH: loop header
LB: loop body
LE: loop exit
PB: predicated region body
PF: predicated region fallthrough
CT: control target
= control target key end

     0   :  { %s1236_s21 = smov 0   ;;  %s1414_s0 = inlined_call_operand.vmem [shape: f32[128,4], index: 0, kind: input, shape index: {}]   ;;  %s1415_s1 = inlined_call_operand.vmem [shape: f32[4,32], index: 1, kind: input, shape index: {}]   ;;  %s1416_s2 = inlined_call_operand.vmem [shape: f32[1,32], index: 2, kind: input, shape index: {}]   ;;  %s1417_s3 = inlined_call_operand.vmem [shape: f32[16,32], index: 3, kind: input, shape index: {}]   ;;  %s1418_s4 = inlined_call_operand.vmem [shape: f32[1,16], index: 4, kind: input, shape index: {}]   ;;  %s1419_s5 = inlined_call_operand.vmem [shape: f32[128,64], index: 5, kind: output, shape index: {0}]   ;;  %s1420_s6 = inlined_call_operand.vmem [shape: s32[128,8], index: 6, kind: output, shape index: {1}]  }
   0x1 LB: > { %s1044_s22 = sadd.s32 4294967295, %s1197_s21   ;;  %p1048_p0 = scmp.ge.s32.totalorder %s1197_s21, 1  ;;  %s1197_s21 = sphi %s1236_s21, %s17_s21  }
   0x2   : > { %p216_p1 = scmp.lt.s32.totalorder %s1197_s21, 3 }
   0x4   : > { %p217_p2 = pnand %p1048_p0, %p216_p1 }
   0x5   : > { %v277_v0 = vld [vmem:[%s1415_s1] sm:$0xf] (!%p217_p2)  ;;  %vm310_vm0 = vcmask (!%p217_p2), 1043456   ;;  %s1049_s25 = sshll.u32 (!%p217_p2), %s1044_s22, 3  ;;  %v420_v2 = vld [vmem:[%s1417_s3 + $0x8] sm:$0xff] (!%p217_p2)  ;;  %vm421_vm1 = vcmask (!%p217_p2), 261120   ;;  %v580_v63 = vlaneseq (!%p217_p2) }
   0x6   : > { %220 = sbr.rel (%p217_p2) target bundleno = 1242 (0x4da), region = 40  ;;  %v419_v1 = vld [vmem:[%s1417_s3] sm:$0xff] (!%p217_p2)  ;;  %1123 = vmatprep.subr.msk.mxu0 (!%p217_p2), %vm310_vm0, %v277_v0  ;;  %p252_p3 = scmp.lt.s32.totalorder (!%p217_p2), %s1049_s25, 15  ;;  %1179 = vmatprep.subr.msk.mxu1 (!%p217_p2), %vm310_vm0, %v277_v0  ;;  %vm1255_vm2 = vmpackc.low (!%p217_p2), %vm421_vm1, %vm421_vm1  ;;  %vm285_vm3 = vcmask (!%p217_p2), 31744   ;;  %vm582_vm4 = vcmask (!%p217_p2), 130048  }
   0x7   : > { %1124 = vmatpush3.msk.msra.mxu0 (!%p217_p2), %vm310_vm0, %v277_v0  ;;  %1180 = vmatpush3.msk.msra.mxu1 (!%p217_p2), %vm310_vm0, %v277_v0  ;;  %v1169_v3 = vpack.c.bf16 (!%p217_p2), %v420_v2, %v419_v1  ;;  %v1055_v13 = vld [vmem:[%s1416_s2] ss:$0 sm:$0xff] (!%p217_p2)  ;;  %v1323_v0 = vand.u32 (!%p217_p2), 127, %v580_v63  ;;  %s1200_s17 = smov (!%p217_p2), 32  }
   0x8   : > { %v1075_v32 = vld [vmem:[%s1418_s4] ss:$0 sm:$0xff] (!%p217_p2) }
   0x9   : > { %1171 = vmatprep.subr.msk.bf16.mxu1 (!%p217_p2), %vm1255_vm2, %v1169_v3  ;;  %1176 = vmatprep.subr.bf16.mxu0 (!%p217_p2), %v1169_v3 }
   0xd   : > { %s1424_s25 = smov (!%p252_p3, %s1049_s25), 15 }
   0xe   : > { %s1261_s30 = sshll.u32 %s1424_s25, 3 }
   0xf   : > { %s255_s9 = scalar_lea.vmem %s1414_s0, %s1261_s30  ;;  %s1348_s16 = scalar_lea.vmem %s1420_s6, %s1261_s30 }
  0x10   : > { %v269_v5 = vld [vmem:[%s255_s9] sm:$0xff]  ;;  %v270_v6 = vld [vmem:[%s255_s9 + $0x8] sm:$0xff]  ;;  %v271_v7 = vld [vmem:[%s255_s9 + $0x10] sm:$0xff]  ;;  %s261_s20 = scalar_lea.vmem %s1419_s5, %s1261_s30 }
  0x11   : > { %1125 = vmatprep.mubr.msk.f32.mxu0 %vm285_vm3, %v269_v5  ;;  %v273_v8 = vld [vmem:[%s255_s9 + $0x20] sm:$0xff]  ;;  %v274_v9 = vld [vmem:[%s255_s9 + $0x28] sm:$0xff]  ;;  %v275_v10 = vld [vmem:[%s255_s9 + $0x30] sm:$0xff] }
  0x12   : > { %1126 = vmatmul.mubr.msk.f32.vlgmr.msra.gmra.mrb[0].mxu0 %vm285_vm3, %v270_v6  ;;  %1131 = vmatprep.mubr.msk.f32.mxu1 %vm285_vm3, %v273_v8  ;;  %v272_v11 = vld [vmem:[%s255_s9 + $0x18] sm:$0xff] }
  0x13   : > { %1128 = vmatprep.mubr.msk.f32.mxu0 %vm285_vm3, %v271_v7  ;;  %1132 = vmatmul.mubr.msk.f32.vlgmr.msra.gmra.mrb[0].mxu1 %vm285_vm3, %v274_v9  ;;  %v276_v12 = vld [vmem:[%s255_s9 + $0x38] sm:$0xff] }
  0x14   : > { %1134 = vmatprep.mubr.msk.f32.mxu1 %vm285_vm3, %v275_v10  ;;  %1174 = vmatpush3.bf16.xpose.msk.msra.mxu1 %vm1255_vm2, %v1169_v3 }
  0x15   : > { %1178 = vmatpush3.bf16.msra.mxu0 %v1169_v3 }
  0x16   : > { %1129 = vmatmul.mubr.msk.f32.gmra.mrb[2].mxu0 %vm285_vm3, %v272_v11 }
  0x17   : > { %1135 = vmatmul.mubr.msk.f32.gmra.mrb[2].mxu1 %vm285_vm3, %v276_v12 }
  0xe5   : > { %v1127_v14 = vpop.f32.mrb[0].mxu0 }
  0xe6   : > { %v380_v15 = vpop.f32.mrb[1].mxu0  ;;  %v1133_v16 = vpop.f32.mrb[0].mxu1  ;;  %v1282_v19 = vadd.f32 %v1127_v14, %v1055_v13 }
  0xe7   : > { %v1280_v17 = vadd.f32 %v1055_v13, %v380_v15  ;;  %v400_v18 = vpop.f32.mrb[1].mxu1  ;;  %v1296_v27 = vadd.f32 %v1133_v16, %v1055_v13 }
  0xe8   : > { %v1290_v24 = vadd.f32 %v1055_v13, %v400_v18 }
  0xe9   : > { %v1130_v20 = vpop.f32.mrb[2].mxu0  ;;  %1141 = vmatprep.mubr.msk.f32.mxu1 %vm421_vm1, %v1280_v17 }
  0xea   : > { %v390_v21 = vpop.f32.mrb[3].mxu0  ;;  %1142 = vmatmul.mubr.msk.f32.vlgmr.msra.gmra.mrb[4].mxu1 %vm421_vm1, %v1282_v19  ;;  %v1136_v22 = vpop.f32.mrb[2].mxu1  ;;  %v1292_v26 = vadd.f32 %v1130_v20, %v1055_v13 }
  0xeb   : > { %v1288_v23 = vadd.f32 %v1055_v13, %v390_v21  ;;  %v410_v25 = vpop.f32.mrb[3].mxu1  ;;  %v1304_v29 = vadd.f32 %v1136_v22, %v1055_v13 }
  0xec   : > { %v1302_v28 = vadd.f32 %v1055_v13, %v410_v25 }
  0xed   : > { %1144 = vmatprep.mubr.msk.f32.mxu1 %vm421_vm1, %v1288_v23 }
  0xee   : > { %1145 = vmatmul.mubr.msk.f32.gmra.mrb[6].mxu1 %vm421_vm1, %v1292_v26 }
  0xef   : > { %1147 = vmatprep.mubr.msk.f32.mxu1 %vm421_vm1, %v1290_v24 }
  0xf2   : > { %1148 = vmatmul.mubr.msk.f32.gmra.mrb[8].mxu1 %vm421_vm1, %v1296_v27 }
  0xf3   : > { %1150 = vmatprep.mubr.msk.f32.mxu1 %vm421_vm1, %v1302_v28 }
  0xf6   : > { %1151 = vmatmul.mubr.msk.f32.gmra.mrb[10].mxu1 %vm421_vm1, %v1304_v29 }
 0x1bd   : > { %v1143_v30 = vpop.f32.mrb[4].mxu1 }
 0x1be   : > { %v518_v31 = vpop.f32.mrb[5].mxu1  ;;  %v559_v33 = vmul.f32 2.0, %v1143_v30 }
 0x1bf   : > { %v558_v34 = vmul.f32 2.0, %v518_v31 }
 0x1c0   : > { %v573_v41 = vsub.f32 %v1075_v32, %v559_v33 }
 0x1c1   : > { %v1146_v35 = vpop.f32.mrb[6].mxu1  ;;  %v572_v36 = vsub.f32 %v1075_v32, %v558_v34 }
 0x1c2   : > { %v528_v37 = vpop.f32.mrb[7].mxu1  ;;  %v561_v38 = vmul.f32 2.0, %v1146_v35  ;;  %v586_v47 = vsel %vm582_vm4, %v573_v41, inf }
 0x1c3   : > { %v560_v39 = vmul.f32 2.0, %v528_v37  ;;  %v583_v40 = vsel %vm582_vm4, %v572_v36, inf }
 0x1c4   : > { %584 = vmin.xlane.f32.xlu0 %v583_v40  ;;  %v575_v49 = vsub.f32 %v1075_v32, %v561_v38 }
 0x1c5   : > { %v1149_v42 = vpop.f32.mrb[8].mxu1  ;;  %v574_v43 = vsub.f32 %v1075_v32, %v560_v39 }
 0x1c6   : > { %v563_v44 = vmul.f32 2.0, %v1149_v42  ;;  %v538_v45 = vpop.f32.mrb[9].mxu1  ;;  %v592_v56 = vsel %vm582_vm4, %v575_v49, inf }
 0x1c7   : > { %v562_v46 = vmul.f32 2.0, %v538_v45  ;;  %v589_v48 = vsel %vm582_vm4, %v574_v43, inf }
 0x1c8   : > { %587 = vmin.xlane.f32.xlu0 %v586_v47  ;;  %590 = vmin.xlane.f32.xlu1 %v589_v48  ;;  %v577_v52 = vsub.f32 %v1075_v32, %v563_v44 }
 0x1c9   : > { %v1152_v50 = vpop.f32.mrb[10].mxu1  ;;  %v576_v51 = vsub.f32 %v1075_v32, %v562_v46 }
 0x1ca   : > { %v565_v53 = vmul.f32 2.0, %v1152_v50  ;;  %v548_v54 = vpop.f32.mrb[11].mxu1  ;;  %v598_v59 = vsel %vm582_vm4, %v577_v52, inf }
 0x1cb   : > { %v564_v55 = vmul.f32 2.0, %v548_v54  ;;  %v595_v57 = vsel %vm582_vm4, %v576_v51, inf }
 0x1cc   : > { %593 = vmin.xlane.f32.xlu1 %v592_v56  ;;  %596 = vmin.xlane.f32.xlu0 %v595_v57  ;;  %v579_v60 = vsub.f32 %v1075_v32, %v565_v53 }
 0x1cd   : > { %v578_v58 = vsub.f32 %v1075_v32, %v564_v55 }
 0x1ce   : > { %v604_v62 = vsel %vm582_vm4, %v579_v60, inf }
 0x1cf   : > { %v601_v61 = vsel %vm582_vm4, %v578_v58, inf }
 0x1d0   : > { %599 = vmin.xlane.f32.xlu1 %v598_v59  ;;  %602 = vmin.xlane.f32.xlu0 %v601_v61 }
 0x1d4   : > { %605 = vmin.xlane.f32.xlu1 %v604_v62 }
 0x251   : > { %v585_v1 = vpop.xlane.xlu0 %584 }
 0x252   : > { %vm607_vm5 = vcmp.le.f32.partialorder %v572_v36, %v585_v1 }
 0x253   : > { %v615_v2 = vsel %vm607_vm5, %v1323_v0, 16 }
 0x254   : > { %v623_v3 = vsel %vm582_vm4, %v615_v2, 2147483647 }
 0x255   : > { %v588_v4 = vpop.xlane.xlu0 %587  ;;  %v591_v5 = vpop.xlane.xlu1 %590  ;;  %v625_v6 = vshra.s32 %v623_v3, 16 }
 0x256   : > { %vm608_vm6 = vcmp.le.f32.partialorder %v573_v41, %v588_v4  ;;  %vm609_vm7 = vcmp.le.f32.partialorder %v574_v43, %v591_v5 }
 0x257   : > { %v616_v7 = vsel %vm608_vm6, %v1323_v0, 16  ;;  %v617_v8 = vsel %vm609_vm7, %v1323_v0, 16  ;;  %v627_v9 = vcvt.s32.f32 %v625_v6  ;;  %vm945_vm7 = vcmask 64512  }
 0x258   : > { %v638_v10 = vsel %vm582_vm4, %v616_v7, 2147483647  ;;  %v653_v11 = vsel %vm582_vm4, %v617_v8, 2147483647 }
 0x259   : > { %v594_v12 = vpop.xlane.xlu1 %593  ;;  %v597_v13 = vpop.xlane.xlu0 %596  ;;  %628 = vmin.xlane.f32.xlu0 %v627_v9  ;;  %v640_v14 = vshra.s32 %v638_v10, 16  ;;  %v655_v15 = vshra.s32 %v653_v11, 16  ;;  %v654_v53 = vand.u32 65535, %v653_v11 }
 0x25a   : > { %vm610_vm8 = vcmp.le.f32.partialorder %v575_v49, %v594_v12  ;;  %vm611_vm9 = vcmp.le.f32.partialorder %v576_v51, %v597_v13  ;;  %v624_v49 = vand.u32 65535, %v623_v3 }
 0x25b   : > { %v618_v16 = vsel %vm610_vm8, %v1323_v0, 16  ;;  %v619_v18 = vsel %vm611_vm9, %v1323_v0, 16  ;;  %v642_v20 = vcvt.s32.f32 %v640_v14  ;;  %v657_v21 = vcvt.s32.f32 %v655_v15 }
 0x25c   : > { %v668_v22 = vsel %vm582_vm4, %v618_v16, 2147483647  ;;  %v683_v25 = vsel %vm582_vm4, %v619_v18, 2147483647  ;;  %v626_v51 = vcvt.s32.f32 %v624_v49 }
 0x25d   : > { %v600_v30 = vpop.xlane.xlu1 %599  ;;  %643 = vmin.xlane.f32.xlu1 %v642_v20  ;;  %658 = vmin.xlane.f32.xlu0 %v657_v21  ;;  %v603_v31 = vpop.xlane.xlu0 %602  ;;  %v670_v32 = vshra.s32 %v668_v22, 16  ;;  %v685_v33 = vshra.s32 %v683_v25, 16  ;;  %v669_v59 = vand.u32 65535, %v668_v22 }
 0x25e   : > { %vm612_vm10 = vcmp.le.f32.partialorder %v577_v52, %v600_v30  ;;  %vm613_vm11 = vcmp.le.f32.partialorder %v578_v58, %v603_v31  ;;  %v639_v52 = vand.u32 65535, %v638_v10  ;;  %v656_v58 = vcvt.s32.f32 %v654_v53 }
 0x25f   : > { %v620_v34 = vsel %vm612_vm10, %v1323_v0, 16  ;;  %v621_v35 = vsel %vm613_vm11, %v1323_v0, 16  ;;  %v672_v36 = vcvt.s32.f32 %v670_v32  ;;  %v687_v37 = vcvt.s32.f32 %v685_v33 }
 0x260   : > { %v698_v38 = vsel %vm582_vm4, %v620_v34, 2147483647  ;;  %v713_v39 = vsel %vm582_vm4, %v621_v35, 2147483647  ;;  %v641_v57 = vcvt.s32.f32 %v639_v52  ;;  %v671_v2 = vcvt.s32.f32 %v669_v59 }
 0x261   : > { %673 = vmin.xlane.f32.xlu1 %v672_v36  ;;  %v606_v40 = vpop.xlane.xlu1 %605  ;;  %688 = vmin.xlane.f32.xlu0 %v687_v37  ;;  %v700_v41 = vshra.s32 %v698_v38, 16  ;;  %v715_v42 = vshra.s32 %v713_v39, 16  ;;  %v699_v4 = vand.u32 65535, %v698_v38  ;;  %v714_v5 = vand.u32 65535, %v713_v39 }
 0x262   : > { %vm614_vm12 = vcmp.le.f32.partialorder %v579_v60, %v606_v40  ;;  %v684_v60 = vand.u32 65535, %v683_v25 }
 0x263   : > { %v622_v43 = vsel %vm614_vm12, %v1323_v0, 16  ;;  %v702_v44 = vcvt.s32.f32 %v700_v41  ;;  %v717_v45 = vcvt.s32.f32 %v715_v42  ;;  %v701_v10 = vcvt.s32.f32 %v699_v4 }
 0x264   : > { %v728_v46 = vsel %vm582_vm4, %v622_v43, 2147483647  ;;  %v686_v3 = vcvt.s32.f32 %v684_v60  ;;  %v716_v11 = vcvt.s32.f32 %v714_v5  ;;  %v1199_v41 = vmov 0.0  }
 0x265   : > { %703 = vmin.xlane.f32.xlu1 %v702_v44  ;;  %718 = vmin.xlane.f32.xlu0 %v717_v45  ;;  %v730_v47 = vshra.s32 %v728_v46, 16  ;;  %v729_v12 = vand.u32 65535, %v728_v46 }
 0x267   : > { %v732_v48 = vcvt.s32.f32 %v730_v47  ;;  %v731_v16 = vcvt.s32.f32 %v729_v12 }
 0x269   : > { %733 = vmin.xlane.f32.xlu1 %v732_v48 }
 0x2e6   : > { %v629_v50 = vpop.xlane.xlu0 %628 }
 0x2e7   : > { %vm630_vm13 = vcmp.eq.f32.partialorder %v627_v9, %v629_v50 }
 0x2e8   : > { %v631_v54 = vsel %vm630_vm13, %v626_v51, inf }
 0x2e9   : > { %632 = vmin.xlane.f32.xlu0 %v631_v54 }
 0x2ea   : > { %v644_v55 = vpop.xlane.xlu1 %643  ;;  %v659_v56 = vpop.xlane.xlu0 %658 }
 0x2eb   : > { %vm645_vm14 = vcmp.eq.f32.partialorder %v642_v20, %v644_v55  ;;  %vm660_vm15 = vcmp.eq.f32.partialorder %v657_v21, %v659_v56  ;;  %v635_v20 = vcvt.f32.s32 %v629_v50  ;;  %v650_v21 = vcvt.f32.s32 %v644_v55 }
 0x2ec   : > { %v646_v61 = vsel %vm645_vm14, %v641_v57, inf  ;;  %v661_v62 = vsel %vm660_vm15, %v656_v58, inf  ;;  %v665_v30 = vcvt.f32.s32 %v659_v56 }
 0x2ed   : > { %647 = vmin.xlane.f32.xlu1 %v646_v61  ;;  %662 = vmin.xlane.f32.xlu0 %v661_v62  ;;  %v636_v25 = vshll.u32 %v635_v20, 16  ;;  %v651_v33 = vshll.u32 %v650_v21, 16 }
 0x2ee   : > { %v674_v63 = vpop.xlane.xlu1 %673  ;;  %v689_v1 = vpop.xlane.xlu0 %688  ;;  %v666_v38 = vshll.u32 %v665_v30, 16 }
 0x2ef   : > { %vm675_vm0 = vcmp.eq.f32.partialorder %v672_v36, %v674_v63  ;;  %vm690_vm2 = vcmp.eq.f32.partialorder %v687_v37, %v689_v1  ;;  %v680_v34 = vcvt.f32.s32 %v674_v63  ;;  %v695_v35 = vcvt.f32.s32 %v689_v1 }
 0x2f0   : > { %v676_v6 = vsel %vm675_vm0, %v671_v2, inf  ;;  %v691_v7 = vsel %vm690_vm2, %v686_v3, inf }
 0x2f1   : > { %677 = vmin.xlane.f32.xlu1 %v676_v6  ;;  %692 = vmin.xlane.f32.xlu0 %v691_v7  ;;  %v696_v46 = vshll.u32 %v695_v35, 16 }
 0x2f2   : > { %v704_v8 = vpop.xlane.xlu1 %703  ;;  %v719_v9 = vpop.xlane.xlu0 %718 }
 0x2f3   : > { %vm705_vm3 = vcmp.eq.f32.partialorder %v702_v44, %v704_v8  ;;  %vm720_vm5 = vcmp.eq.f32.partialorder %v717_v45, %v719_v9  ;;  %v681_v45 = vshll.u32 %v680_v34, 16  ;;  %v710_v47 = vcvt.f32.s32 %v704_v8 }
 0x2f4   : > { %v706_v13 = vsel %vm705_vm3, %v701_v10, inf  ;;  %v721_v14 = vsel %vm720_vm5, %v716_v11, inf }
 0x2f5   : > { %707 = vmin.xlane.f32.xlu1 %v706_v13  ;;  %722 = vmin.xlane.f32.xlu0 %v721_v14  ;;  %v711_v57 = vshll.u32 %v710_v47, 16 }
 0x2f6   : > { %v1341_v15 = vpop.xlane.xlu1 %733 }
 0x2f7   : > { %vm735_vm6 = vcmp.eq.f32.partialorder %v732_v48, %v1341_v15  ;;  %v725_v48 = vcvt.f32.s32 %v719_v9  ;;  %v740_v59 = vcvt.f32.s32 %v1341_v15 }
 0x2f8   : > { %v736_v18 = vsel %vm735_vm6, %v731_v16, inf }
 0x2f9   : > { %737 = vmin.xlane.f32.xlu1 %v736_v18  ;;  %v726_v58 = vshll.u32 %v725_v48, 16  ;;  %v741_v6 = vshll.u32 %v740_v59, 16 }
 0x376   : > { %v633_v22 = vpop.xlane.xlu0 %632 }
 0x377   : > { %v634_v31 = vcvt.f32.s32 %v633_v22 }
 0x379   : > { %v637_v32 = vadd.s32 %v636_v25, %v634_v31 }
 0x37a   : > { %v648_v36 = vpop.xlane.xlu1 %647  ;;  %v663_v37 = vpop.xlane.xlu0 %662 }
 0x37b   : > { %946 = vst.msk [vmem:[%s1348_s16] sm:$0xff] %vm945_vm7, %v637_v32  ;;  %v649_v39 = vcvt.f32.s32 %v648_v36  ;;  %v664_v40 = vcvt.f32.s32 %v663_v37  ;;  %vm743_vm8 = vcmp.eq.s32.totalorder %v1323_v0, %v637_v32 }
 0x37c   : > { %v1076_v42 = vsel %vm743_vm8, 1.0, %v1199_v41 }
 0x37d   : > { %v652_v43 = vadd.s32 %v651_v33, %v649_v39  ;;  %v667_v44 = vadd.s32 %v666_v38, %v664_v40  ;;  %1157 = vmatprep.mubr.msk.f32.mxu0 %vm582_vm4, %v1076_v42 }
 0x37e   : > { %v678_v49 = vpop.xlane.xlu1 %677  ;;  %v693_v50 = vpop.xlane.xlu0 %692 }
 0x37f   : > { %vm744_vm9 = vcmp.eq.s32.totalorder %v1323_v0, %v652_v43  ;;  %947 = vst.msk [vmem:[%s1348_s16 + $0x8] sm:$0xff] %vm945_vm7, %v652_v43  ;;  %948 = vst.msk [vmem:[%s1348_s16 + $0x10] sm:$0xff] %vm945_vm7, %v667_v44  ;;  %v679_v51 = vcvt.f32.s32 %v678_v49  ;;  %v694_v52 = vcvt.f32.s32 %v693_v50  ;;  %vm745_vm10 = vcmp.eq.s32.totalorder %v1323_v0, %v667_v44 }
 0x380   : > { %v1077_v53 = vsel %vm744_vm9, 1.0, %v1199_v41  ;;  %v1078_v54 = vsel %vm745_vm10, 1.0, %v1199_v41 }
 0x381   : > { %v682_v55 = vadd.s32 %v681_v45, %v679_v51  ;;  %v697_v56 = vadd.s32 %v696_v46, %v694_v52  ;;  %1158 = vmatmul.mubr.msk.f32.vlgmr.msra.gmra.mrb[4].mxu0 %vm582_vm4, %v1077_v53 }
 0x382   : > { %v708_v60 = vpop.xlane.xlu1 %707  ;;  %1160 = vmatprep.mubr.msk.f32.mxu0 %vm582_vm4, %v1078_v54  ;;  %v723_v61 = vpop.xlane.xlu0 %722 }
 0x383   : > { %949 = vst.msk [vmem:[%s1348_s16 + $0x18] sm:$0xff] %vm945_vm7, %v682_v55  ;;  %950 = vst.msk [vmem:[%s1348_s16 + $0x20] sm:$0xff] %vm945_vm7, %v697_v56  ;;  %v709_v62 = vcvt.f32.s32 %v708_v60  ;;  %v724_v63 = vcvt.f32.s32 %v723_v61  ;;  %vm746_vm11 = vcmp.eq.s32.totalorder %v1323_v0, %v682_v55  ;;  %vm747_vm12 = vcmp.eq.s32.totalorder %v1323_v0, %v697_v56 }
 0x384   : > { %v1079_v1 = vsel %vm746_vm11, 1.0, %v1199_v41  ;;  %v1080_v2 = vsel %vm747_vm12, 1.0, %v1199_v41 }
 0x385   : > { %v712_v3 = vadd.s32 %v711_v57, %v709_v62  ;;  %v727_v4 = vadd.s32 %v726_v58, %v724_v63  ;;  %1161 = vmatmul.mubr.msk.f32.gmra.mrb[6].mxu0 %vm582_vm4, %v1079_v1 }
 0x386   : > { %v738_v5 = vpop.xlane.xlu1 %737  ;;  %1163 = vmatprep.mubr.msk.f32.mxu0 %vm582_vm4, %v1080_v2 }
 0x387   : > { %951 = vst.msk [vmem:[%s1348_s16 + $0x28] sm:$0xff] %vm945_vm7, %v712_v3  ;;  %952 = vst.msk [vmem:[%s1348_s16 + $0x30] sm:$0xff] %vm945_vm7, %v727_v4  ;;  %v739_v7 = vcvt.f32.s32 %v738_v5  ;;  %vm748_vm13 = vcmp.eq.s32.totalorder %v1323_v0, %v712_v3  ;;  %vm749_vm14 = vcmp.eq.s32.totalorder %v1323_v0, %v727_v4 }
 0x388   : > { %v1081_v8 = vsel %vm748_vm13, 1.0, %v1199_v41  ;;  %v1082_v9 = vsel %vm749_vm14, 1.0, %v1199_v41 }
 0x389   : > { %v742_v10 = vadd.s32 %v741_v6, %v739_v7  ;;  %1164 = vmatmul.mubr.msk.f32.gmra.mrb[8].mxu0 %vm582_vm4, %v1081_v8 }
 0x38a   : > { %1166 = vmatprep.mubr.msk.f32.mxu0 %vm582_vm4, %v1082_v9 }
 0x38b   : > { %953 = vst.msk [vmem:[%s1348_s16 + $0x38] sm:$0xff] %vm945_vm7, %v742_v10  ;;  %vm750_vm15 = vcmp.eq.s32.totalorder %v1323_v0, %v742_v10 }
 0x38c   : > { %v1083_v11 = vsel %vm750_vm15, 1.0, %v1199_v41 }
 0x38d   : > { %1167 = vmatmul.mubr.msk.f32.gmra.mrb[10].mxu0 %vm582_vm4, %v1083_v11  ;;  %vm936_vm4 = vcmask 523264  }
 0x454   : > { %v1159_v12 = vpop.f32.mrb[4].mxu0 }
 0x455   : > { %906 = vrot.lane.b32.xlu1 %v1159_v12, %s1200_s17  ;;  %v857_v13 = vpop.f32.mrb[5].mxu0 }
 0x456   : > { %904 = vrot.lane.b32.xlu0 %v857_v13, %s1200_s17 }
 0x458   : > { %v1162_v14 = vpop.f32.mrb[6].mxu0 }
 0x459   : > { %910 = vrot.lane.b32.xlu1 %v1162_v14, %s1200_s17  ;;  %v867_v15 = vpop.f32.mrb[7].mxu0 }
 0x45c   : > { %v1165_v16 = vpop.f32.mrb[8].mxu0 }
 0x45d   : > { %908 = vrot.lane.b32.xlu1 %v867_v15, %s1200_s17  ;;  %v877_v18 = vpop.f32.mrb[9].mxu0 }
 0x45e   : > { %912 = vrot.lane.b32.xlu0 %v877_v18, %s1200_s17 }
 0x460   : > { %v1168_v20 = vpop.f32.mrb[10].mxu0 }
 0x461   : > { %914 = vrot.lane.b32.xlu1 %v1165_v16, %s1200_s17  ;;  %v887_v21 = vpop.f32.mrb[11].mxu0 }
 0x462   : > { %916 = vrot.lane.b32.xlu0 %v887_v21, %s1200_s17 }
 0x465   : > { %918 = vrot.lane.b32.xlu1 %v1168_v20, %s1200_s17 }
 0x4c7   : > { %v907_v0 = vpop.permute.xlu1 %906 }
 0x4c8   : > { %v929_v22 = vsel %vm421_vm1, %v1282_v19, %v907_v0  ;;  %v905_v25 = vpop.permute.xlu0 %904 }
 0x4c9   : > { %938 = vst.msk [vmem:[%s261_s20 + $0x8] sm:$0xff] %vm936_vm4, %v929_v22  ;;  %v928_v30 = vsel %vm421_vm1, %v1280_v17, %v905_v25 }
 0x4ca   : > { %937 = vst.msk [vmem:[%s261_s20] sm:$0xff] %vm936_vm4, %v928_v30 }
 0x4cb   : > { %v911_v31 = vpop.permute.xlu1 %910 }
 0x4cc   : > { %v931_v32 = vsel %vm421_vm1, %v1292_v26, %v911_v31 }
 0x4cd   : > { %940 = vst.msk [vmem:[%s261_s20 + $0x18] sm:$0xff] %vm936_vm4, %v931_v32 }
 0x4cf   : > { %v909_v33 = vpop.permute.xlu1 %908 }
 0x4d0   : > { %v930_v34 = vsel %vm421_vm1, %v1288_v23, %v909_v33  ;;  %v913_v35 = vpop.permute.xlu0 %912 }
 0x4d1   : > { %939 = vst.msk [vmem:[%s261_s20 + $0x10] sm:$0xff] %vm936_vm4, %v930_v34  ;;  %v932_v19 = vsel %vm421_vm1, %v1290_v24, %v913_v35 }
 0x4d2   : > { %941 = vst.msk [vmem:[%s261_s20 + $0x20] sm:$0xff] %vm936_vm4, %v932_v19 }
 0x4d3   : > { %v915_v17 = vpop.permute.xlu1 %914 }
 0x4d4   : > { %v933_v36 = vsel %vm421_vm1, %v1296_v27, %v915_v17  ;;  %v917_v37 = vpop.permute.xlu0 %916 }
 0x4d5   : > { %942 = vst.msk [vmem:[%s261_s20 + $0x28] sm:$0xff] %vm936_vm4, %v933_v36  ;;  %v934_v26 = vsel %vm421_vm1, %v1302_v28, %v917_v37 }
 0x4d6   : > { %943 = vst.msk [vmem:[%s261_s20 + $0x30] sm:$0xff] %vm936_vm4, %v934_v26 }
 0x4d7   : > { %v919_v23 = vpop.permute.xlu1 %918 }
 0x4d8   : > { %v935_v38 = vsel %vm421_vm1, %v1304_v29, %v919_v23 }
 0x4d9   : > { %944 = vst.msk [vmem:[%s261_s20 + $0x38] sm:$0xff] %vm936_vm4, %v935_v38 }
 0x4da PF: > { %s17_s21 = sadd.s32 1, %s1197_s21  }
 0x4db   : > { %p14_p4 = scmp.ge.s32.totalorder %s17_s21, 4  }
 0x4dd   :  { %16 = sbr.rel (!%p14_p4) target bundleno = 1 (0x1), region = 82 }

</bundles_post_ra>
